<compile_context>
chip_gen: v7x
topology: tpu7x:2x2x1
jax: 0.10.0
libtpu: 0.0.40
codegen_flags: <defaults>
</compile_context>

<pallas_src>
import functools

import jax
import jax.numpy as jnp
from jax.experimental import pallas as pl
from jax.experimental.pallas import tpu as pltpu


def _cdiv(a, b):
    return -(-a // b)


def _round_up(v, m):
    return _cdiv(v, m) * m


def _hw_config():
    """Return (tile_bytes, vmem_limit_bytes, has_two_tensorcores) for this chip."""
    try:
        kind = jax.devices()[0].device_kind.lower()
    except Exception:
        kind = ""
    if "v7" in kind or "7x" in kind:
        # 64 MiB physical / 32 MiB scoped VMEM per TC; 2 TensorCores per chip.
        return 4 * 1024 * 1024, 32 * 1024 * 1024, True
    if "v5" in kind or "v6" in kind:
        # v5e/v5p/v6e: 128 MiB VMEM, single TC -> bigger tiles, fewer grid steps.
        return 8 * 1024 * 1024, 64 * 1024 * 1024, False
    # Unknown / older parts: stay conservative.
    return 2 * 1024 * 1024, 32 * 1024 * 1024, False


def _pick_cols(total):
    """Largest lane-dense column count (multiple of 128) that divides total."""
    for c in (1024, 512, 256, 128):
        if total % c == 0:
            return c
    return None


def _pick_block_rows(rows, cols, itemsize, sublane, tile_bytes, two_tc):
    """Row-tile height: sublane-aligned, tile_bytes budget, >=2 steps on v7x."""
    max_block_rows = max(
        sublane, (tile_bytes // (cols * itemsize)) // sublane * sublane
    )
    if rows > max_block_rows:
        return max_block_rows                   # >= 2 grid steps automatically
    if two_tc and rows >= 2 * sublane:
        # Force >= 2 grid steps so both v7x TensorCores (each with its own HBM
        # path) get work; keep the block a sublane multiple for packed stores.
        return _round_up(_cdiv(rows, 2), sublane)
    return rows                                 # single full block (always legal)


def _mul_kernel(x_ref, o_ref, *, a):
    # `a` is a compile-time Python scalar -> folded into an immediate operand.
    # Weak-typed multiply keeps x's native dtype (bf16 stays bf16 on v6e/v7x).
    o_ref[...] = (x_ref[...] * a).astype(o_ref.dtype)


def _mul_const_2d(x2d, a, block_rows, vmem_limit):
    rows, cols = x2d.shape
    grid = (_cdiv(rows, block_rows),)
    return pl.pallas_call(
        functools.partial(_mul_kernel, a=a),
        out_shape=jax.ShapeDtypeStruct((rows, cols), x2d.dtype),
        grid=grid,
        in_specs=[pl.BlockSpec((block_rows, cols), lambda i: (i, 0))],
        out_specs=pl.BlockSpec((block_rows, cols), lambda i: (i, 0)),
        compiler_params=pltpu.CompilerParams(
            dimension_semantics=("parallel",),   # v7x: shard rows across 2 TCs
            vmem_limit_bytes=vmem_limit,
        ),
    )(x2d)


def mul_const(x: jax.Array, a) -> jax.Array:
    """y = x * a, elementwise, with a static scalar constant `a`."""
    # Traced scalars, empty tensors and integer inputs keep plain XLA semantics
    # (PyTorch promotes int-tensor * float-scalar to float; don't fake that).
    if (
        not isinstance(a, (int, float))
        or x.size == 0
        or not jnp.issubdtype(x.dtype, jnp.floating)
    ):
        return x * a

    orig_shape = x.shape
    total = x.size
    itemsize = jnp.dtype(x.dtype).itemsize
    sublane = max(8, 32 // itemsize)            # 8 f32, 16 bf16, 32 int8/fp8

    tile_bytes, vmem_limit, two_tc = _hw_config()

    cols = _pick_cols(total)
    if cols is None:
        # Ragged size: kernel on the 1024-divisible bulk, fused XLA mul on the
        # < 1024-element tail. One extra pass (concat) instead of two (pad+slice).
        bulk = (total // 1024) * 1024
        if bulk == 0:
            return x * a                        # tiny tensor: not worth a kernel
        flat = x.reshape(-1)
        rows = bulk // 1024
        head2d = flat[:bulk].reshape(rows, 1024)
        block_rows = _pick_block_rows(rows, 1024, itemsize, sublane,
                                      tile_bytes, two_tc)
        head = _mul_const_2d(head2d, a, block_rows, vmem_limit).reshape(-1)
        tail = flat[bulk:] * a
        return jnp.concatenate([head, tail]).reshape(orig_shape)

    rows = total // cols
    x2d = x.reshape(rows, cols)                 # free reshape: cols | total
    block_rows = _pick_block_rows(rows, cols, itemsize, sublane,
                                  tile_bytes, two_tc)
    out2d = _mul_const_2d(x2d, a, block_rows, vmem_limit)
    return out2d.reshape(orig_shape)


if __name__ == "__main__":
    key = jax.random.PRNGKey(0)

    # MulConst constructor constant (module default is a=1; use a non-trivial
    # value so the multiply is actually exercised).
    a = 2.5

    x = jax.random.normal(key, (2, 4, 16, 16), dtype=jnp.float32)
    y = jax.block_until_ready(mul_const(x, a))
    ref = x * a
    assert y.shape == x.shape and y.dtype == x.dtype
    assert jnp.allclose(y, ref, atol=1e-6, rtol=1e-6), "mismatch vs reference"

    # Exercise the ragged (kernel bulk + XLA tail) path with a small
    # non-128-multiple size.
    x2 = jax.random.normal(jax.random.PRNGKey(1), (2, 515), dtype=jnp.float32)
    y2 = jax.block_until_ready(mul_const(x2, a))
    assert y2.shape == x2.shape and y2.dtype == x2.dtype
    assert jnp.allclose(y2, x2 * a, atol=1e-6, rtol=1e-6), "ragged mismatch"

    print("KERNEL_OK")
</pallas_src>

<mosaic_0001>
module attributes {stable_mosaic.version = 11 : i64} {
  func.func @_mul_kernel(%arg0: i32, %arg1: memref<2x1024xf32, #tpu.memory_space<vmem>>, %arg2: memref<2x1024xf32, #tpu.memory_space<vmem>>) attributes {dimension_semantics = [#tpu.dimension_semantics<parallel>], iteration_bounds = array<i64: 1>, scalar_prefetch = 0 : i64, scratch_operands = 0 : i64, tpu.core_type = #tpu.core_type<tc>, window_params = [{transform_indices = @transform_0, window_bounds = array<i64: 2, 1024>}, {transform_indices = @transform_1, window_bounds = array<i64: 2, 1024>}]} {
    %c0 = arith.constant 0 : index
    %c0_0 = arith.constant 0 : index
    %0 = vector.load %arg1[%c0, %c0_0] : memref<2x1024xf32, #tpu.memory_space<vmem>>, vector<2x1024xf32>
    %cst = arith.constant 2.500000e+00 : f32
    %1 = vector.broadcast %cst : f32 to vector<2x1024xf32>
    %2 = arith.mulf %0, %1 : vector<2x1024xf32>
    %c0_1 = arith.constant 0 : index
    %c0_2 = arith.constant 0 : index
    %3 = vector.load %arg2[%c0_1, %c0_2] : memref<2x1024xf32, #tpu.memory_space<vmem>>, vector<2x1024xf32>
    tpu.vector_store %arg2[%c0_1, %c0_2], %2 {strides = array<i32>} : memref<2x1024xf32, #tpu.memory_space<vmem>>, vector<2x1024xf32>,
    return
  }
  func.func @transform_0(%arg0: i32) -> (i32, i32) {
    %c0_i32 = arith.constant 0 : i32
    %c0_i32_0 = arith.constant 0 : i32
    return %arg0, %c0_i32 : i32, i32
  }
  func.func @transform_1(%arg0: i32) -> (i32, i32) {
    %c0_i32 = arith.constant 0 : i32
    %c0_i32_0 = arith.constant 0 : i32
    return %arg0, %c0_i32 : i32, i32
  }
}

</mosaic_0001>

<bundles_post_ra>
// kernel: tpu_custom_call.1
= control target key start
LH: loop header
LB: loop body
LE: loop exit
PB: predicated region body
PF: predicated region fallthrough
CT: control target
= control target key end

     0   :  { %6 = vsyncpa [#allocation3], 0  ;;  %s128_s0 = inlined_call_operand.hbm [shape: f32[2,1024], index: 0, kind: input, shape index: {}]   ;;  %s129_s1 = inlined_call_operand.hbm [shape: f32[2,1024], index: 1, kind: output, shape index: {}]  }
   0x1   :  { %7 = vsyncpa [#allocation4], 0  ;;  %s92_s6 = smov [#allocation2]   ;;  %s44_s10 = scalar_lea.hbm %s128_s0, 256 }
   0x2   :  { %s14_s7 = sshll.u32 %s92_s6, 4  ;;  %p45_p0 = scmp.ne.s32.totalorder %s128_s0, %s44_s10  ;;  %s15_s7 = int_to_ptr.vmem [resolvable:$true] %s14_s7 }
   0x3   :  { %p48_p1 = scmp.lt.u32.totalorder %s44_s10, %s128_s0 }
   0x5   :  { %p50_p2 = pnand %p48_p1, %p45_p0 }
   0x7   :  { %53 = shalt.err (!%p50_p2)
}
   0x8   :  { %s54_s15 = scalar_lea.vmem %s15_s7, 256  ;;  %p59_p4 = scmp.lt.s32.totalorder %s15_s7, %s15_s7 }
   0x9   :  { %p55_p3 = scmp.ne.s32.totalorder %s15_s7, %s54_s15  ;;  %p60_p5 = scmp.lt.s32.totalorder %s54_s15, %s54_s15 }
   0xb   :  { %p61_p6 = por %p60_p5, %p59_p4 }
   0xd   :  { %p62_p7 = pnand %p61_p6, %p55_p3 }
   0xf   :  { %65 = shalt.err (!%p62_p7)
}
  0x10   :  { %17 = dma.hbm_to_vmem [thread:$0]  %s128_s0, 256, %s15_s7, [#allocation3]  }
  0x11   :  { %88 = dma.done.wait [#allocation3], 256  }
  0x12   :  { %89 = vsyncadd [#allocation3], 4294967040  ;;  %s93_s18 = smov [#allocation5]   ;;  %v21_v0 = vld [vmem:[#allocation2] sm:$0xff]  ;;  %v22_v1 = vld [vmem:[#allocation2 + $0x8] sm:$0xff] }
  0x13   :  { %s33_s19 = sshll.u32 %s93_s18, 4  ;;  %v23_v2 = vmul.f32 2.5, %v21_v0  ;;  %v24_v3 = vmul.f32 2.5, %v22_v1  ;;  %s34_s19 = int_to_ptr.vmem [resolvable:$true] %s33_s19 }
  0x14   :  { %s66_s20 = scalar_lea.vmem %s34_s19, 256  ;;  %p71_p9 = scmp.lt.s32.totalorder %s34_s19, %s34_s19 }
  0x15   :  { %25 = vst [vmem:[#allocation5] sm:$0xff] %v23_v2  ;;  %26 = vst [vmem:[#allocation5 + $0x8] sm:$0xff] %v24_v3  ;;  %p67_p8 = scmp.ne.s32.totalorder %s34_s19, %s66_s20  ;;  %p72_p10 = scmp.lt.s32.totalorder %s66_s20, %s66_s20 }
  0x17   :  { %p73_p11 = por %p72_p10, %p71_p9 }
  0x19   :  { %p74_p12 = pnand %p73_p11, %p67_p8 }
  0x1b   :  { %77 = shalt.err (!%p74_p12)
}
  0x1c   :  { %s78_s22 = scalar_lea.hbm %s129_s1, 256 }
  0x1d   :  { %p79_p13 = scmp.ne.s32.totalorder %s129_s1, %s78_s22  ;;  %p82_p0 = scmp.lt.u32.totalorder %s78_s22, %s129_s1 }
  0x1f   :  { %p84_p1 = pnand %p82_p0, %p79_p13 }
  0x21   :  { %87 = shalt.err (!%p84_p1)
}
  0x22   :  { %36 = dma.vmem_to_hbm [thread:$0]  %s34_s19, 256, %s129_s1, [#allocation4]  }
  0x23   :  { %90 = dma.done.wait [#allocation4], 256  }
  0x24   :  { %91 = vsyncadd [#allocation4], 4294967040 }
  0x25   :  { %40 = vsyncpa [#allocation3], 1 }
  0x26   :  { %41 = vsyncpa [#allocation4], 1 }

</bundles_post_ra>
